<compile_context>
chip_gen: v5e
topology: v5e:2x2
jax: 0.10.0
libtpu: 0.0.40
codegen_flags: <defaults>
</compile_context>

<pallas_src>
import jax
import jax.numpy as jnp
from jax.experimental import pallas as pl
from jax.experimental.pallas import tpu as pltpu


def linear_kernel(x_ref, w_ref, b_ref, o_ref, acc_ref):
    """One output column tile; grid axis 1 is the K reduction (innermost)."""
    k = pl.program_id(1)

    @pl.when(k == 0)
    def _():
        acc_ref[...] = jnp.zeros_like(acc_ref)

    acc_ref[...] += jnp.dot(x_ref[...], w_ref[...],
                            preferred_element_type=jnp.float32)

    @pl.when(k == pl.num_programs(1) - 1)
    def _():
        # Fuse the bias add into the single (lane-dense, unmasked) output store.
        o_ref[...] = (acc_ref[...] + b_ref[...]).astype(o_ref.dtype)


def basic_linear_pallas(x, weight, bias, *, tile_n=128, tile_k=512):
    """y = flatten(x) @ weight.T + bias  (PyTorch nn.Linear semantics).

    weight: (out_features, in_features) — PyTorch layout.
    bias:   (out_features,)
    """
    N = x.shape[0]
    x2d = x.reshape(N, -1)                     # x.view(len(x), -1)
    K = x2d.shape[1]
    M = weight.shape[0]
    assert weight.shape == (M, K)

    # Wrapper-side layout plumbing (free for XLA): kernel consumes a (K, M)
    # weight slab and a 2-D lane-dense bias row.
    w_km = jnp.transpose(weight)               # (K, M)
    b_2d = bias.reshape(1, M)

    # Lane/sublane-aligned tiles where divisible, otherwise the full dim
    # (full-extent blocks are always legal).
    tn = tile_n if M % tile_n == 0 else M
    tk = tile_k if K % tile_k == 0 else K

    grid = (pl.cdiv(M, tn), pl.cdiv(K, tk))    # (parallel cols, K reduction)

    return pl.pallas_call(
        linear_kernel,
        out_shape=jax.ShapeDtypeStruct((N, M), jnp.float32),
        grid=grid,
        in_specs=[
            pl.BlockSpec((N, tk), lambda j, k: (0, k)),    # activations
            pl.BlockSpec((tk, tn), lambda j, k: (k, j)),   # weight tile
            pl.BlockSpec((1, tn), lambda j, k: (0, j)),    # bias tile
        ],
        out_specs=pl.BlockSpec((N, tn), lambda j, k: (0, j)),
        scratch_shapes=[pltpu.VMEM((N, tn), jnp.float32)],
        compiler_params=pltpu.CompilerParams(
            dimension_semantics=("parallel", "arbitrary")),
    )(x2d, w_km, b_2d)


# ------------------------- pure-JAX reference -------------------------
def basic_linear_ref(x, weight, bias):
    x2d = x.reshape(x.shape[0], -1)
    return jnp.dot(x2d, weight.T, precision=jax.lax.Precision.HIGHEST) + bias


if __name__ == "__main__":
    # Small shapes consistent with the module: a (N, C, H, W) feature map that
    # gets flattened, then a Linear to 128 output channels (lane-dense).
    N, C, H, W = 2, 4, 16, 16
    in_channels = C * H * W        # 1024
    out_channels = 128

    key = jax.random.PRNGKey(0)
    kx, kw, kb = jax.random.split(key, 3)

    x = jax.random.normal(kx, (N, C, H, W), jnp.float32)
    weight = jax.random.normal(kw, (out_channels, in_channels),
                               jnp.float32) * 0.02
    bias = jax.random.normal(kb, (out_channels,), jnp.float32) * 0.1

    out = jax.block_until_ready(basic_linear_pallas(x, weight, bias))

    ref = jax.block_until_ready(basic_linear_ref(x, weight, bias))
    assert out.shape == (N, out_channels)
    assert jnp.allclose(out, ref, atol=1e-3, rtol=1e-3), (
        float(jnp.max(jnp.abs(out - ref))))

    print("KERNEL_OK")
</pallas_src>

<mosaic_0001>
module attributes {stable_mosaic.version = 11 : i64} {
  func.func @linear_kernel(%arg0: i32, %arg1: i32, %arg2: memref<2x512xf32, #tpu.memory_space<vmem>>, %arg3: memref<512x128xf32, #tpu.memory_space<vmem>>, %arg4: memref<1x128xf32, #tpu.memory_space<vmem>>, %arg5: memref<2x128xf32, #tpu.memory_space<vmem>>, %arg6: memref<2x128xf32, #tpu.memory_space<vmem>>) attributes {dimension_semantics = [#tpu.dimension_semantics<parallel>, #tpu.dimension_semantics<arbitrary>], iteration_bounds = array<i64: 1, 2>, scalar_prefetch = 0 : i64, scratch_operands = 1 : i64, tpu.core_type = #tpu.core_type<tc>, window_params = [{transform_indices = @transform_0, window_bounds = array<i64: 2, 512>}, {transform_indices = @transform_1, window_bounds = array<i64: 512, 128>}, {transform_indices = @transform_2, window_bounds = array<i64: 1, 128>}, {transform_indices = @transform_3, window_bounds = array<i64: 2, 128>}]} {
    %c0_i32 = arith.constant 0 : i32
    %0 = arith.cmpi eq, %arg1, %c0_i32 : i32
    %1 = arith.extui %0 : i1 to i32
    %c0_i32_0 = arith.constant 0 : i32
    %2 = arith.cmpi ne, %1, %c0_i32_0 : i32
    scf.if %2 {
      %cst_9 = arith.constant 0.000000e+00 : f32
      %12 = vector.broadcast %cst_9 : f32 to vector<2x128xf32>
      %c0_10 = arith.constant 0 : index
      %c0_11 = arith.constant 0 : index
      %13 = vector.load %arg6[%c0_10, %c0_11] : memref<2x128xf32, #tpu.memory_space<vmem>>, vector<2x128xf32>
      tpu.vector_store %arg6[%c0_10, %c0_11], %12 {strides = array<i32>} : memref<2x128xf32, #tpu.memory_space<vmem>>, vector<2x128xf32>,
    } else {
    }
    %c0 = arith.constant 0 : index
    %c0_1 = arith.constant 0 : index
    %3 = vector.load %arg6[%c0, %c0_1] : memref<2x128xf32, #tpu.memory_space<vmem>>, vector<2x128xf32>
    %c0_2 = arith.constant 0 : index
    %c0_3 = arith.constant 0 : index
    %4 = vector.load %arg2[%c0_2, %c0_3] : memref<2x512xf32, #tpu.memory_space<vmem>>, vector<2x512xf32>
    %c0_4 = arith.constant 0 : index
    %c0_5 = arith.constant 0 : index
    %5 = vector.load %arg3[%c0_4, %c0_5] : memref<512x128xf32, #tpu.memory_space<vmem>>, vector<512x128xf32>
    %cst = arith.constant dense<0.000000e+00> : vector<2x128xf32>
    %6 = tpu.matmul %4, %5, %cst {dimension_numbers = #tpu.dot_dimension_numbers<[1], [0], [0], [1], [0, 0, 1, 1], [], []>} : vector<2x512xf32>, vector<512x128xf32>, vector<2x128xf32> -> vector<2x128xf32>
    %7 = arith.addf %3, %6 : vector<2x128xf32>
    %c0_6 = arith.constant 0 : index
    %c0_7 = arith.constant 0 : index
    %8 = vector.load %arg6[%c0_6, %c0_7] : memref<2x128xf32, #tpu.memory_space<vmem>>, vector<2x128xf32>
    tpu.vector_store %arg6[%c0_6, %c0_7], %7 {strides = array<i32>} : memref<2x128xf32, #tpu.memory_space<vmem>>, vector<2x128xf32>,
    %c1_i32 = arith.constant 1 : i32
    %9 = arith.cmpi eq, %arg1, %c1_i32 : i32
    %10 = arith.extui %9 : i1 to i32
    %c0_i32_8 = arith.constant 0 : i32
    %11 = arith.cmpi ne, %10, %c0_i32_8 : i32
    scf.if %11 {
      %c0_9 = arith.constant 0 : index
      %c0_10 = arith.constant 0 : index
      %12 = vector.load %arg6[%c0_9, %c0_10] : memref<2x128xf32, #tpu.memory_space<vmem>>, vector<2x128xf32>
      %c0_11 = arith.constant 0 : index
      %c0_12 = arith.constant 0 : index
      %13 = vector.load %arg4[%c0_11, %c0_12] : memref<1x128xf32, #tpu.memory_space<vmem>>, vector<1x128xf32>
      %14 = vector.broadcast %13 : vector<1x128xf32> to vector<2x128xf32>
      %15 = arith.addf %12, %14 : vector<2x128xf32>
      %c0_13 = arith.constant 0 : index
      %c0_14 = arith.constant 0 : index
      %16 = vector.load %arg5[%c0_13, %c0_14] : memref<2x128xf32, #tpu.memory_space<vmem>>, vector<2x128xf32>
      tpu.vector_store %arg5[%c0_13, %c0_14], %15 {strides = array<i32>} : memref<2x128xf32, #tpu.memory_space<vmem>>, vector<2x128xf32>,
    } else {
    }
    return
  }
  func.func @transform_0(%arg0: i32, %arg1: i32) -> (i32, i32) {
    %c0_i32 = arith.constant 0 : i32
    %c0_i32_0 = arith.constant 0 : i32
    return %c0_i32, %arg1 : i32, i32
  }
  func.func @transform_1(%arg0: i32, %arg1: i32) -> (i32, i32) {
    %c0_i32 = arith.constant 0 : i32
    return %arg1, %arg0 : i32, i32
  }
  func.func @transform_2(%arg0: i32, %arg1: i32) -> (i32, i32) {
    %c0_i32 = arith.constant 0 : i32
    %c0_i32_0 = arith.constant 0 : i32
    return %c0_i32, %arg0 : i32, i32
  }
  func.func @transform_3(%arg0: i32, %arg1: i32) -> (i32, i32) {
    %c0_i32 = arith.constant 0 : i32
    %c0_i32_0 = arith.constant 0 : i32
    return %c0_i32, %arg0 : i32, i32
  }
}

</mosaic_0001>

<bundles_post_ra>
// kernel: tpu_custom_call.1
= control target key start
LH: loop header
LB: loop body
LE: loop exit
PB: predicated region body
PF: predicated region fallthrough
CT: control target
= control target key end

     0   :  { %8 = vsyncpa [#allocation4], 0  ;;  %s988_s0 = inlined_call_operand.hbm [shape: f32[2,1024], index: 0, kind: input, shape index: {}]   ;;  %s989_s1 = inlined_call_operand.hbm [shape: f32[1024,128], index: 1, kind: input, shape index: {}]   ;;  %s990_s2 = inlined_call_operand.vmem [shape: f32[1,128], index: 2, kind: input, shape index: {}]   ;;  %s991_s3 = inlined_call_operand.hbm [shape: f32[2,128], index: 3, kind: output, shape index: {}]  }
   0x1   :  { %10 = vsyncpa [#allocation4 + $0x1], 0 }
   0x2   :  { %11 = vsyncpa [#allocation7], 0 }
   0x3   :  { %13 = vsyncpa [#allocation7 + $0x1], 0 }
   0x4   :  { %14 = vsyncpa [#allocation5], 0  ;;  %s802_s12 = smov 0   ;;  %s804_s13 = smov 0  }
   0x5   :  { %s806_s14 = smov 0   ;;  %s808_s15 = smov 0  }
   0x6   :  { %s810_s16 = smov 0   ;;  %s812_s17 = smov 0  }
   0x7 LB: > { %s538_s18 = sadd.s32 4294967295, %s776_s17   ;;  %s29_s19 = sadd.s32 1, %s772_s16  ;;  %s776_s17 = sphi %s812_s17, %s20_s17   ;;  %s772_s16 = sphi %s810_s16, %s999_s16   ;;  %s768_s15 = sphi %s808_s15, %s998_s15   ;;  %s764_s14 = sphi %s806_s14, %s997_s14   ;;  %s760_s13 = sphi %s804_s13, %s996_s13   ;;  %s756_s12 = sphi %s802_s12, %s995_s12  }
   0x8   : > { %p30_p0 = scmp.ge.s32.totalorder %s29_s19, 2  ;;  %s39_s20 = sadd.s32 1, %s764_s14 }
   0x9   : > { %p46_p1 = scmp.ne.s32.totalorder %s764_s14, %s760_s13  ;;  %p47_p2 = scmp.eq.s32.totalorder %s776_s17, 0 }
   0xa   : > { %s1001_s19 = smov (%p30_p0, %s29_s19), 0  ;;  %p52_p4 = scmp.ne.s32.totalorder %s760_s13, %s756_s12 }
   0xb   : > { %p838_p3 = por %p47_p2, %p46_p1  ;;  %s36_s22 = ssub.s32 %s772_s16, %s1001_s19 }
   0xc   : > { %p53_p5 = scmp.eq.s32.totalorder %s538_s18, 0  ;;  %p37_p6 = scmp.eq.s32.totalorder %s36_s22, 0 }
   0xd   : > { %p574_p8 = scmp.lt.s32.totalorder %s776_s17, 2  ;;  %s856_s25 = sand.u32 1, %s764_s14  }
   0xe   : > { %p847_p7 = por %p53_p5, %p52_p4  ;;  %s557_s26 = sshll.u32 %s772_s16, 3 }
   0xf   : > { %s853_s24 = scalar_select %p37_p6, %s764_s14, %s39_s20  }
  0x10   : > { %s542_s27 = sshll.u32 %s856_s25, 3  ;;  %s171_s30 = scalar_lea.hbm %s988_s0, %s557_s26 }
  0x11   : > { %s173_s4 = sshll.u32 %s171_s30, 4  ;;  %s166_s5 = scalar_lea.vmem [#allocation3], %s542_s27  ;;  %s174_s4 = int_to_ptr.hbm [resolvable:$true] %s173_s4 }
  0x12   : > { %s175_s6 = sshll.u32 %s166_s5, 4  ;;  %p865_p9 = pnand %p574_p8, %p838_p3  ;;  %s176_s6 = int_to_ptr.vmem [resolvable:$true] %s175_s6 }
  0x13   : > { %p548_p10 = scmp.ge.s32.totalorder %s776_s17, 1  ;;  %p203_p11 = scmp.lt.s32.totalorder %s776_s17, 3 }
  0x14   : > { %s545_s8 = sshll.u32 %s856_s25, 9  ;;  %s163_s9 = scalar_lea.sflag [#allocation4], %s856_s25 }
  0x15   : > { %570 = dma.hbm_to_vmem [thread:$0]  (!%p865_p9), %s174_s4, 128, %s176_s6, %s163_s9  }
  0x16   : > { %p204_p12 = pnand %p548_p10, %p203_p11  ;;  %s558_s10 = sshll.u32 %s772_s16, 9 }
  0x17   : > { %s186_s11 = scalar_lea.vmem [#allocation6], %s545_s8  ;;  %s192_s21 = scalar_lea.hbm %s989_s1, %s558_s10 }
  0x18   : > { %s195_s12 = sshll.u32 %s186_s11, 4  ;;  %s193_s26 = sshll.u32 %s192_s21, 4  ;;  %s196_s12 = int_to_ptr.vmem [resolvable:$true] %s195_s12  ;;  %s194_s26 = int_to_ptr.hbm [resolvable:$true] %s193_s26 }
  0x19   : > { %s183_s27 = scalar_lea.sflag [#allocation7], %s856_s25  ;;  %s778_s28 = smov 128  }
  0x1a   : > { %s779_s29 = smov 8   ;;  %207 = sbr.rel (%p204_p12) target bundleno = 232 (0xe8), region = 32 }
  0x1b   : > { %573 = dma.hbm_to_vmem [thread:$0]  (!%p865_p9), %s194_s26, 8192, %s196_s12, %s183_s27, %s778_s28, %s778_s28, %s779_s29  }
  0x1c   : > { %s209_s30 = sand.u32 (!%p204_p12), 1, %s760_s13  }
  0x1d   : > { %s549_s4 = sshll.u32 (!%p204_p12), %s209_s30, 3  ;;  %s210_s5 = scalar_lea.sflag (!%p204_p12), [#allocation4], %s209_s30 }
  0x1e   : > { %s883_s6 = scalar_lea.vmem (!%p204_p12), [#allocation3], %s549_s4 }
  0x1f   : > { %743 = dma.done.wait (%p847_p7), %s210_s5, 128  }
  0x20   : > { %745 = vsyncadd (%p847_p7), %s210_s5, 4294967168  ;;  %s550_s8 = sshll.u32 %s209_s30, 9  ;;  %s220_s25 = scalar_lea.sflag [#allocation7], %s209_s30 }
  0x21   : > { %s889_s9 = scalar_lea.vmem [#allocation6], %s550_s8 }
  0x22   : > { %747 = dma.done.wait (%p847_p7), %s220_s25, 8192  }
  0x23   : > { %749 = vsyncadd (%p847_p7), %s220_s25, 4294959104  ;;  %p551_p13 = scmp.ne.s32.totalorder %s768_s15, 0 }
  0x25   : > { %258 = sbr.rel (%p551_p13) target bundleno = 44 (0x2c), region = 44 }
  0x2a   : > { %v780_v0 = vmov 0.0  }
  0x2b   : > { %259 = vst [vmem:[#allocation2] sm:$0x3] %v780_v0 }
  0x2c PF: > { %v309_v1 = vld [vmem:[%s889_s9 + $0x178] sm:$0xff]  ;;  %v308_v2 = vld [vmem:[%s889_s9 + $0x170] sm:$0xff]  ;;  %v307_v6 = vld [vmem:[%s889_s9 + $0x168] sm:$0xff]  ;;  %p552_p0 = scmp.ne.s32.totalorder %s768_s15, 1 }
  0x2d   : > { %v325_v3 = vld [vmem:[%s889_s9 + $0x1f8] sm:$0xff]  ;;  %376 = vmatpush.msra.mxu2 %v309_v1  ;;  %v324_v7 = vld [vmem:[%s889_s9 + $0x1f0] sm:$0xff]  ;;  %v323_v10 = vld [vmem:[%s889_s9 + $0x1e8] sm:$0xff] }
  0x2e   : > { %396 = vmatpush.msra.mxu3 %v325_v3  ;;  %v277_v4 = vld [vmem:[%s889_s9 + $0x78] sm:$0xff]  ;;  %v276_v8 = vld [vmem:[%s889_s9 + $0x70] sm:$0xff]  ;;  %v275_v11 = vld [vmem:[%s889_s9 + $0x68] sm:$0xff] }
  0x2f   : > { %v293_v5 = vld [vmem:[%s889_s9 + $0xf8] sm:$0xff]  ;;  %336 = vmatpush.msra.mxu0 %v277_v4  ;;  %v292_v9 = vld [vmem:[%s889_s9 + $0xf0] sm:$0xff]  ;;  %377 = vmatpush.msra.mxu2 %v308_v2  ;;  %v306_v12 = vld [vmem:[%s889_s9 + $0x160] sm:$0xff] }
  0x30   : > { %356 = vmatpush.msra.mxu1 %v293_v5  ;;  %397 = vmatpush.msra.mxu3 %v324_v7  ;;  %v291_v13 = vld [vmem:[%s889_s9 + $0xe8] sm:$0xff]  ;;  %v322_v14 = vld [vmem:[%s889_s9 + $0x1e0] sm:$0xff]  ;;  %v305_v17 = vld [vmem:[%s889_s9 + $0x158] sm:$0xff] }
  0x31   : > { %337 = vmatpush.msra.mxu0 %v276_v8  ;;  %378 = vmatpush.msra.mxu2 %v307_v6  ;;  %v274_v15 = vld [vmem:[%s889_s9 + $0x60] sm:$0xff]  ;;  %v321_v18 = vld [vmem:[%s889_s9 + $0x1d8] sm:$0xff]  ;;  %v304_v21 = vld [vmem:[%s889_s9 + $0x150] sm:$0xff] }
  0x32   : > { %357 = vmatpush.msra.mxu1 %v292_v9  ;;  %398 = vmatpush.msra.mxu3 %v323_v10  ;;  %v290_v16 = vld [vmem:[%s889_s9 + $0xe0] sm:$0xff]  ;;  %v273_v19 = vld [vmem:[%s889_s9 + $0x58] sm:$0xff]  ;;  %v320_v22 = vld [vmem:[%s889_s9 + $0x1d0] sm:$0xff] }
  0x33   : > { %338 = vmatpush.msra.mxu0 %v275_v11  ;;  %379 = vmatpush.msra.mxu2 %v306_v12  ;;  %v289_v20 = vld [vmem:[%s889_s9 + $0xd8] sm:$0xff]  ;;  %v272_v23 = vld [vmem:[%s889_s9 + $0x50] sm:$0xff]  ;;  %v303_v25 = vld [vmem:[%s889_s9 + $0x148] sm:$0xff] }
  0x34   : > { %358 = vmatpush.msra.mxu1 %v291_v13  ;;  %399 = vmatpush.msra.mxu3 %v322_v14  ;;  %v288_v24 = vld [vmem:[%s889_s9 + $0xd0] sm:$0xff]  ;;  %v319_v26 = vld [vmem:[%s889_s9 + $0x1c8] sm:$0xff]  ;;  %v302_v29 = vld [vmem:[%s889_s9 + $0x140] sm:$0xff] }
  0x35   : > { %339 = vmatpush.msra.mxu0 %v274_v15  ;;  %380 = vmatpush.msra.mxu2 %v305_v17  ;;  %v271_v27 = vld [vmem:[%s889_s9 + $0x48] sm:$0xff]  ;;  %v318_v30 = vld [vmem:[%s889_s9 + $0x1c0] sm:$0xff]  ;;  %v301_v33 = vld [vmem:[%s889_s9 + $0x138] sm:$0xff] }
  0x36   : > { %359 = vmatpush.msra.mxu1 %v290_v16  ;;  %400 = vmatpush.msra.mxu3 %v321_v18  ;;  %v287_v28 = vld [vmem:[%s889_s9 + $0xc8] sm:$0xff]  ;;  %v270_v31 = vld [vmem:[%s889_s9 + $0x40] sm:$0xff]  ;;  %v317_v34 = vld [vmem:[%s889_s9 + $0x1b8] sm:$0xff] }
  0x37   : > { %340 = vmatpush.msra.mxu0 %v273_v19  ;;  %381 = vmatpush.msra.mxu2 %v304_v21  ;;  %v286_v32 = vld [vmem:[%s889_s9 + $0xc0] sm:$0xff]  ;;  %v269_v35 = vld [vmem:[%s889_s9 + $0x38] sm:$0xff]  ;;  %v300_v37 = vld [vmem:[%s889_s9 + $0x130] sm:$0xff] }
  0x38   : > { %360 = vmatpush.msra.mxu1 %v289_v20  ;;  %401 = vmatpush.msra.mxu3 %v320_v22  ;;  %v285_v36 = vld [vmem:[%s889_s9 + $0xb8] sm:$0xff]  ;;  %v316_v38 = vld [vmem:[%s889_s9 + $0x1b0] sm:$0xff]  ;;  %v299_v41 = vld [vmem:[%s889_s9 + $0x128] sm:$0xff] }
  0x39   : > { %341 = vmatpush.msra.mxu0 %v272_v23  ;;  %382 = vmatpush.msra.mxu2 %v303_v25  ;;  %v268_v39 = vld [vmem:[%s889_s9 + $0x30] sm:$0xff]  ;;  %v315_v42 = vld [vmem:[%s889_s9 + $0x1a8] sm:$0xff]  ;;  %v298_v46 = vld [vmem:[%s889_s9 + $0x120] sm:$0xff] }
  0x3a   : > { %361 = vmatpush.msra.mxu1 %v288_v24  ;;  %402 = vmatpush.msra.mxu3 %v319_v26  ;;  %v284_v40 = vld [vmem:[%s889_s9 + $0xb0] sm:$0xff]  ;;  %v267_v43 = vld [vmem:[%s889_s9 + $0x28] sm:$0xff]  ;;  %v314_v47 = vld [vmem:[%s889_s9 + $0x1a0] sm:$0xff] }
  0x3b   : > { %342 = vmatpush.msra.mxu0 %v271_v27  ;;  %383 = vmatpush.msra.mxu2 %v302_v29  ;;  %v283_v44 = vld [vmem:[%s889_s9 + $0xa8] sm:$0xff]  ;;  %v261_v45 = vld [vmem:[%s883_s6] sm:$0xff]  ;;  %v266_v48 = vld [vmem:[%s889_s9 + $0x20] sm:$0xff] }
  0x3c   : > { %362 = vmatpush.msra.mxu1 %v287_v28  ;;  %403 = vmatpush.msra.mxu3 %v318_v30  ;;  %327 = vst [vmem:[#allocation1] ss:$4 sm:$0xff] %v261_v45  ;;  %v282_v49 = vld [vmem:[%s889_s9 + $0xa0] sm:$0xff]  ;;  %v297_v50 = vld [vmem:[%s889_s9 + $0x118] sm:$0xff]  ;;  %v296_v54 = vld [vmem:[%s889_s9 + $0x110] sm:$0xff] }
  0x3d   : > { %343 = vmatpush.msra.mxu0 %v270_v31  ;;  %384 = vmatpush.msra.mxu2 %v301_v33  ;;  %v313_v51 = vld [vmem:[%s889_s9 + $0x198] sm:$0xff]  ;;  %v312_v55 = vld [vmem:[%s889_s9 + $0x190] sm:$0xff]  ;;  %v295_v58 = vld [vmem:[%s889_s9 + $0x108] sm:$0xff] }
  0x3e   : > { %363 = vmatpush.msra.mxu1 %v286_v32  ;;  %404 = vmatpush.msra.mxu3 %v317_v34  ;;  %v265_v52 = vld [vmem:[%s889_s9 + $0x18] sm:$0xff]  ;;  %v264_v56 = vld [vmem:[%s889_s9 + $0x10] sm:$0xff]  ;;  %v311_v59 = vld [vmem:[%s889_s9 + $0x188] sm:$0xff] }
  0x3f   : > { %344 = vmatpush.msra.mxu0 %v269_v35  ;;  %385 = vmatpush.msra.mxu2 %v300_v37  ;;  %v281_v53 = vld [vmem:[%s889_s9 + $0x98] sm:$0xff]  ;;  %v280_v57 = vld [vmem:[%s889_s9 + $0x90] sm:$0xff]  ;;  %v263_v60 = vld [vmem:[%s889_s9 + $0x8] sm:$0xff] }
  0x40   : > { %364 = vmatpush.msra.mxu1 %v285_v36  ;;  %405 = vmatpush.msra.mxu3 %v316_v38  ;;  %v279_v61 = vld [vmem:[%s889_s9 + $0x88] sm:$0xff]  ;;  %v294_v62 = vld [vmem:[%s889_s9 + $0x100] sm:$0xff] }
  0x41   : > { %345 = vmatpush.msra.mxu0 %v268_v39  ;;  %386 = vmatpush.msra.mxu2 %v299_v41  ;;  %v310_v63 = vld [vmem:[%s889_s9 + $0x180] sm:$0xff]  ;;  %v260_v12 = vld [vmem:[#allocation2] sm:$0x3] }
  0x42   : > { %365 = vmatpush.msra.mxu1 %v284_v40  ;;  %406 = vmatpush.msra.mxu3 %v315_v42  ;;  %v262_v2 = vld [vmem:[%s889_s9] sm:$0xff] }
  0x43   : > { %346 = vmatpush.msra.mxu0 %v267_v43  ;;  %387 = vmatpush.msra.mxu2 %v298_v46  ;;  %v330_v0 = vld.sshfl [vmem:[#allocation1 + $0x10] sm:$0xff pattern:$0x73625140]  ;;  %v331_v1 = vld.sshfl [vmem:[#allocation1 + $0x18] sm:$0xff pattern:$0x73625140] }
  0x44   : > { %366 = vmatpush.msra.mxu1 %v283_v44  ;;  %407 = vmatpush.msra.mxu3 %v314_v47  ;;  %v278_v3 = vld [vmem:[%s889_s9 + $0x80] sm:$0xff]  ;;  %v329_v5 = vld.sshfl [vmem:[#allocation1 + $0x8] sm:$0xff pattern:$0x73625140] }
  0x45   : > { %347 = vmatpush.msra.mxu0 %v266_v48  ;;  %388 = vmatpush.msra.mxu2 %v297_v50  ;;  %v328_v4 = vld.sshfl [vmem:[#allocation1] sm:$0xff pattern:$0x73625140] }
  0x46   : > { %367 = vmatpush.msra.mxu1 %v282_v49  ;;  %408 = vmatpush.msra.mxu3 %v313_v51 }
  0x47   : > { %348 = vmatpush.msra.mxu0 %v265_v52  ;;  %389 = vmatpush.msra.mxu2 %v296_v54 }
  0x48   : > { %368 = vmatpush.msra.mxu1 %v281_v53  ;;  %409 = vmatpush.msra.mxu3 %v312_v55 }
  0x49   : > { %349 = vmatpush.msra.mxu0 %v264_v56  ;;  %390 = vmatpush.msra.mxu2 %v295_v58 }
  0x4a   : > { %369 = vmatpush.msra.mxu1 %v280_v57  ;;  %410 = vmatpush.msra.mxu3 %v311_v59 }
  0x4b   : > { %350 = vmatpush.msra.mxu0 %v263_v60  ;;  %391 = vmatpush.msra.mxu2 %v294_v62 }
  0x4c   : > { %370 = vmatpush.msra.mxu1 %v279_v61  ;;  %411 = vmatpush.msra.mxu3 %v310_v63 }
  0x4d   : > { %392 = vmatmul.f32.vlgmr.msra.gmra.mxu2 %v330_v0  ;;  %412 = vmatmul.f32.vlgmr.msra.gmra.mxu3 %v331_v1 }
  0x4e   : > { %351 = vmatpush.msra.mxu0 %v262_v2  ;;  %371 = vmatpush.msra.mxu1 %v278_v3 }
  0x4f   : > { %352 = vmatmul.f32.vlgmr.msra.gmra.mxu0 %v328_v4  ;;  %372 = vmatmul.f32.vlgmr.msra.gmra.mxu1 %v329_v5 }
  0xcc   : > { %v353_v6 = vpop.f32.mrf.mxu0  ;;  %v373_v7 = vpop.f32.mrf.mxu1 }
  0xcd   : > { %v374_v8 = vadd.f32 %v373_v7, %v353_v6 }
  0xd0   : > { %v393_v9 = vpop.f32.mrf.mxu2  ;;  %v413_v10 = vpop.f32.mrf.mxu3 }
  0xd1   : > { %v394_v11 = vadd.f32 %v393_v9, %v374_v8 }
  0xd3   : > { %v414_v13 = vadd.f32 %v413_v10, %v394_v11  ;;  %421 = sbr.rel (%p552_p0) target bundleno = 226 (0xe2), region = 48 }
  0xd5   : > { %v416_v14 = vadd.f32 %v414_v13, %v260_v12 }
  0xd7   : > { %417 = vst [vmem:[#allocation2] sm:$0x3] %v416_v14 }
  0xd8   : > { %v629_v16 = vld [vmem:[%s990_s2] ss:$0 sm:$0xff] }
  0xde   : > { %v422_v15 = vld [vmem:[#allocation2] sm:$0x3] }
  0xdf   : > { %v427_v17 = vadd.f32 %v629_v16, %v422_v15 }
  0xe1   : > { %428 = vst [vmem:[#allocation8] sm:$0x3] %v427_v17 }
  0xe2 PF: > { %p575_p1 = scmp.eq.s32.totalorder %s538_s18, 1  ;;  %s439_s12 = sshll.u32 %s991_s3, 4  ;;  %s440_s12 = int_to_ptr.hbm [resolvable:$true] %s439_s12 }
  0xe3   : > { %s781_s20 = smov [#allocation8]  }
  0xe4   : > { %s437_s22 = sshll.u32 %s781_s20, 4  ;;  %s438_s22 = int_to_ptr.vmem [resolvable:$true] %s437_s22 }
  0xe5   : > { %564 = dma.vmem_to_hbm [thread:$0]  (%p575_p1), %s438_s22, 32, %s440_s12, [#allocation5]  }
  0xe6   : > { %751 = dma.done.wait (%p575_p1), [#allocation5], 32  }
  0xe7   : > { %753 = vsyncadd (%p575_p1), [#allocation5], 4294967264 }
  0xe8 PF: > { %s20_s17 = sadd.s32 1, %s776_s17   ;;  %s995_s12 = smov %s760_s13 }
  0xe9   : > { %p17_p2 = scmp.ge.s32.totalorder %s20_s17, 4   ;;  %s996_s13 = smov %s764_s14 }
  0xea   : > { %s997_s14 = smov %s853_s24  ;;  %s998_s15 = smov %s772_s16 }
  0xeb   : > { %s999_s16 = smov %s1001_s19  ;;  %19 = sbr.rel (!%p17_p2) target bundleno = 7 (0x7), region = 94 }
  0xf0   :  { %453 = vsyncpa [#allocation4], 1 }
  0xf1   :  { %455 = vsyncpa [#allocation4 + $0x1], 1 }
  0xf2   :  { %456 = vsyncpa [#allocation7], 1 }
  0xf3   :  { %458 = vsyncpa [#allocation7 + $0x1], 1 }
  0xf4   :  { %459 = vsyncpa [#allocation5], 1 }
  0xf5   :  { %461 = vsyncpa [#allocation5 + $0x1], 1 }

</bundles_post_ra>
